<compile_context>
chip_gen: v7x
topology: tpu7x:2x2x1
jax: 0.10.0
libtpu: 0.0.40
codegen_flags: <defaults>
</compile_context>

<pallas_src>
import numpy as np
import jax
import jax.numpy as jnp
from jax import lax
from jax.experimental import pallas as pl
from jax.experimental.pallas import tpu as pltpu

NC_PAD = 128  # classifier output padded to one dense 128-lane block


# ----------------------------- Pallas kernels ------------------------------

def _cell_sum_kernel(mfeat_ref, out_ref):
    """Per-cell channel sums of mask-premultiplied features.

    mfeat_ref : (Tn, L, Tc) f32   (mask * feat), channel-last tile
    out_ref   : (Tn, Tc)    f32
    """
    out_ref[...] = jnp.sum(mfeat_ref[...], axis=1)


def _roi_bap_cls_kernel(bid_ref, roi_ref, pool_ref, bgp_ref, wmask_ref,
                        wcls_ref, out_ref):
    """Fused BAP attention + weighted-average ROI pooling + 1x1 classifier.

    Processes B_R ROIs per grid step (static unroll).
    bid_ref   : (Rpad,)          int32 SMEM (scalar prefetch) batch id per ROI
    roi_ref   : (B_R, Lmax, C)   bf16  bilinearly sampled ROIs (zero padded)
    pool_ref  : (B_R, OP, Lmax)  bf16  static window-sum pooling matrices
    bgp_ref   : (N, G2, C)       bf16  L2-normalized bg prototypes (resident)
    wmask_ref : (N, 1, G2)       f32   valid*use_bap/count per image (resident)
    wcls_ref  : (C, NC_PAD)      bf16  1x1 classifier weights (resident)
    out_ref   : (B_R*OP, NC_PAD) f32   logits, lane/sublane-dense block
    """
    g = pl.program_id(0)
    B_R, Lmax, C = roi_ref.shape
    OP = pool_ref.shape[1]
    wcls = wcls_ref[...]                                        # (C, NC_PAD)

    for r in range(B_R):                                        # static unroll
        bid = bid_ref[g * B_R + r]                              # SMEM scalar
        roi = roi_ref[r]                                        # (Lmax, C) bf16
        pool = pool_ref[r]                                      # (OP, Lmax) bf16
        bgp = bgp_ref[bid]                                      # (G2, C) bf16
        w = wmask_ref[bid]                                      # (1, G2) f32

        # cosine similarity against the image's bg prototypes (MXU, f32 acc)
        roi_f32 = roi.astype(jnp.float32)
        ssq = jnp.sum(roi_f32 * roi_f32, axis=1, keepdims=True)  # (Lmax, 1)
        inv_norm = 1.0 / jnp.maximum(jnp.sqrt(ssq), 1e-12)       # F.normalize eps
        sims = lax.dot_general(roi, bgp, (((1,), (1,)), ((), ())),
                               preferred_element_type=jnp.float32)  # (Lmax, G2)
        sims = jnp.maximum(sims * inv_norm, 0.0)

        # weighted mean over valid cells (weights precomputed per image);
        # w == 0 (no valid cells / BAP disabled) -> bg = 0 -> fg = 1 == GAP
        bg = jnp.sum(sims * w, axis=1, keepdims=True)            # (Lmax, 1)
        fg = 1.0 - bg
        fg_bf = fg.astype(jnp.bfloat16)

        # weighted average pooling as matmuls with the static pool matrix
        numer = jnp.dot(pool, roi * fg_bf,
                        preferred_element_type=jnp.float32)      # (OP, C)
        denom = jnp.dot(pool, fg_bf,
                        preferred_element_type=jnp.float32)      # (OP, 1)
        protos = numer / (denom + 1e-12)                         # exact divide

        # fused 1x1 classifier epilogue
        logits = jnp.dot(protos.astype(jnp.bfloat16), wcls,
                         preferred_element_type=jnp.float32)     # (OP, NC_PAD)
        out_ref[pl.ds(r * OP, OP), :] = logits


# ----------------------------- kernel wrappers ------------------------------

def _grid_pad_amounts(H, W, grid_size):
    Pad_H = grid_size - H % grid_size
    Pad_W = grid_size - W % grid_size
    if Pad_H == grid_size:
        Pad_H = 0
    if Pad_W == grid_size:
        Pad_W = 0
    if Pad_H % 2 == 0:
        if Pad_W % 2 == 0:
            hp, wp = (Pad_H // 2, Pad_H // 2), (Pad_W // 2, Pad_W // 2)
        else:
            hp, wp = (Pad_H // 2, Pad_H // 2), (0, Pad_W)
    elif Pad_W % 2 == 0:
        hp, wp = (0, Pad_H), (Pad_W // 2, Pad_W // 2)
    else:
        hp, wp = (0, Pad_H), (0, Pad_W)
    return hp, wp


def _pick_c_tile(C, L, Tn, budget_bytes=24 * 1024 * 1024):
    """Largest lane tile (<=512) dividing C whose double-buffered block fits."""
    if C % 128 != 0:
        return C                              # small-channel level: full axis
    for cand in (512, 256, 128):
        if C % cand == 0 and 2 * Tn * L * cand * 4 <= budget_bytes:
            return cand
    return 128


def grid_cell_pool(feat_nhwc, mask_nhw, GS):
    """Background prototypes per grid cell (tiled lane-dense Pallas sum)."""
    N, fH, fW, C = feat_nhwc.shape
    hp, wp = _grid_pad_amounts(fH, fW, GS)
    f = jnp.pad(feat_nhwc, ((0, 0), hp, wp, (0, 0)))
    m = jnp.pad(mask_nhw, ((0, 0), hp, wp))
    PH, PW = fH + hp[0] + hp[1], fW + wp[0] + wp[1]
    cH, cW = PH // GS, PW // GS
    G2, L = GS * GS, (PH // GS) * (PW // GS)

    # mask premultiplied into the features; fuses with this transpose/reshape
    mf = f * m[..., None]
    mf = mf.reshape(N, GS, cH, GS, cW, C)
    mf = jnp.transpose(mf, (0, 1, 3, 2, 4, 5)).reshape(N * G2, L, C)
    mc = m.reshape(N, GS, cH, GS, cW)
    mc = jnp.transpose(mc, (0, 1, 3, 2, 4)).reshape(N * G2, L)
    cell_sums = jnp.sum(mc, axis=1)                            # (Ncells,) tiny

    Ncells = N * G2
    Tn = 8 if Ncells % 8 == 0 else Ncells
    Tc = _pick_c_tile(C, L, Tn)
    sums = pl.pallas_call(
        _cell_sum_kernel,
        out_shape=jax.ShapeDtypeStruct((Ncells, C), jnp.float32),
        grid=(Ncells // Tn, C // Tc),
        in_specs=[pl.BlockSpec((Tn, L, Tc), lambda i, j: (i, 0, j))],
        out_specs=pl.BlockSpec((Tn, Tc), lambda i, j: (i, j)),
        compiler_params=pltpu.CompilerParams(
            dimension_semantics=("parallel", "parallel"),
            vmem_limit_bytes=32 * 1024 * 1024),
    )(mf)

    bg_protos = sums / (cell_sums[:, None] + 1e-12)            # exact division
    return bg_protos.reshape(N, G2, C), cell_sums.reshape(N, G2)


def _pick_roi_batch(Lmax, C, OP, budget_bytes=24 * 1024 * 1024):
    """ROIs per grid step such that double-buffered blocks stay in budget."""
    br = 8
    per_roi = 2 * (Lmax * C * 2 + OP * Lmax * 2 + OP * NC_PAD * 4)
    while br > 1 and br * per_roi > budget_bytes:
        br //= 2
    return br


def fused_bap_cls(batch_ids, roi_pad, pool_mats, bgp_n, wmask, wcls):
    """One gridded pallas_call over all ROIs of a level (B_R ROIs / step)."""
    R, Lmax, C = roi_pad.shape
    OP = pool_mats.shape[1]
    N, G2 = wmask.shape[0], wmask.shape[2]
    B_R = _pick_roi_batch(Lmax, C, OP)
    Rpad = ((R + B_R - 1) // B_R) * B_R
    if Rpad != R:
        roi_pad = jnp.pad(roi_pad, ((0, Rpad - R), (0, 0), (0, 0)))
        pool_mats = jnp.pad(pool_mats, ((0, Rpad - R), (0, 0), (0, 0)))
        batch_ids = jnp.pad(batch_ids, (0, Rpad - R))

    grid_spec = pltpu.PrefetchScalarGridSpec(
        num_scalar_prefetch=1,
        grid=(Rpad // B_R,),
        in_specs=[
            pl.BlockSpec((B_R, Lmax, C), lambda g, bid: (g, 0, 0)),
            pl.BlockSpec((B_R, OP, Lmax), lambda g, bid: (g, 0, 0)),
            pl.BlockSpec((N, G2, C), lambda g, bid: (0, 0, 0)),
            pl.BlockSpec((N, 1, G2), lambda g, bid: (0, 0, 0)),
            pl.BlockSpec((C, NC_PAD), lambda g, bid: (0, 0)),
        ],
        out_specs=pl.BlockSpec((B_R * OP, NC_PAD), lambda g, bid: (g, 0)),
    )
    out = pl.pallas_call(
        _roi_bap_cls_kernel,
        grid_spec=grid_spec,
        out_shape=jax.ShapeDtypeStruct((Rpad * OP, NC_PAD), jnp.float32),
        compiler_params=pltpu.CompilerParams(
            dimension_semantics=("parallel",),
            vmem_limit_bytes=48 * 1024 * 1024),   # fits v7x 64 MiB/TC budget
    )(batch_ids, roi_pad, pool_mats, bgp_n, wmask, wcls)
    return out[:R * OP]


# ------------------------------- host helpers --------------------------------

def interpolate_nearest_nhw(bg_mask, oh, ow):
    # torch F.interpolate(mode='nearest'): src = floor(dst * in/out)
    N, _, H, W = bg_mask.shape
    hi = np.floor(np.arange(oh) * (H / oh)).astype(np.int32)
    wi = np.floor(np.arange(ow) * (W / ow)).astype(np.int32)
    m = bg_mask[:, 0]
    return m[:, hi][:, :, wi]                                  # (N, oh, ow)


def _build_pool_matrix(h, w, OH, OW, maxH, maxW):
    """Static (OH*OW, maxH*maxW) matrix reproducing weighted_avg_pool_2d's
    window sums, including its bottom / left replicate padding."""
    sH = h // OH
    sW = w // OW
    padW = 0
    if sH == 0:
        sH = 1
    if sW == 0:
        sW = 1
        padW = OW - w
    ksH = max(h - (OH - 1) * sH, 1)
    ksW = max(w - (OW - 1) * sW, 1)
    P = np.zeros((OH * OW, maxH * maxW), np.float32)
    for oh in range(OH):
        for ow in range(OW):
            o = oh * OW + ow
            for py in range(oh * sH, oh * sH + ksH):
                yy = min(py, h - 1)                       # bottom replicate
                for px in range(ow * sW, ow * sW + ksW):
                    xx = min(max(px - padW, 0), w - 1)    # left replicate
                    P[o, yy * maxW + xx] += 1.0
    return P


def _build_roi_inputs(feat_lc, fH, fW, bboxes_np, batchID_np, N, OH, OW):
    """Per-ROI bilinear sampling (grid_sample, zeros padding,
    align_corners=False) built from host-known bboxes as static gathers,
    padded to a common Lmax; ROIs / pool matrices shipped as bf16."""
    order = [int(k) for b in range(N) for k in np.nonzero(batchID_np == b)[0]]
    norm_H, norm_W = (fH - 1) / 2.0, (fW - 1) / 2.0
    w_lo = bboxes_np[:, 0] * norm_W + norm_W
    w_hi = bboxes_np[:, 2] * norm_W + norm_W
    h_lo = bboxes_np[:, 1] * norm_H + norm_H
    h_hi = bboxes_np[:, 3] * norm_H + norm_H
    widths = np.maximum((np.ceil(w_hi) - np.floor(w_lo)).astype(np.int64), 1)
    heights = np.maximum((np.ceil(h_hi) - np.floor(h_lo)).astype(np.int64), 1)
    maxH = int(max(int(heights[k]) for k in order))
    maxW = int(max(int(widths[k]) for k in order))
    Lmax = maxH * maxW

    roi_list, pool_list, bids = [], [], []
    for k in order:
        b = int(batchID_np[k])
        h, w = int(heights[k]), int(widths[k])
        wmin, hmin, wmax, hmax = [float(v) for v in bboxes_np[k, :4]]
        gx = np.linspace(wmin, wmax, w)
        gy = np.linspace(hmin, hmax, h)
        ix = ((gx + 1.0) * fW - 1.0) / 2.0
        iy = ((gy + 1.0) * fH - 1.0) / 2.0
        IX, IY = np.meshgrid(ix, iy)
        x0, y0 = np.floor(IX), np.floor(IY)
        fx = (IX - x0).astype(np.float32)
        fy = (IY - y0).astype(np.float32)
        idxs = np.zeros((4, maxH, maxW), np.int32)
        wgts = np.zeros((4, maxH, maxW), np.float32)
        corners = [(0, 0, (1 - fx) * (1 - fy)), (1, 0, fx * (1 - fy)),
                   (0, 1, (1 - fx) * fy), (1, 1, fx * fy)]
        for c, (dx, dy, wc) in enumerate(corners):
            xi, yi = x0 + dx, y0 + dy
            ok = ((xi >= 0) & (xi <= fW - 1) & (yi >= 0) & (yi <= fH - 1))
            xc = np.clip(xi, 0, fW - 1).astype(np.int32)
            yc = np.clip(yi, 0, fH - 1).astype(np.int32)
            idxs[c, :h, :w] = yc * fW + xc
            wgts[c, :h, :w] = wc * ok.astype(np.float32)
        roi = jnp.sum(
            jnp.take(feat_lc[b], jnp.asarray(idxs.reshape(4, Lmax)), axis=0)
            * jnp.asarray(wgts.reshape(4, Lmax, 1)), axis=0)   # (Lmax, C) f32
        roi_list.append(roi)
        pool_list.append(_build_pool_matrix(h, w, OH, OW, maxH, maxW))
        bids.append(b)

    roi_pad = jnp.stack(roi_list, axis=0).astype(jnp.bfloat16)        # (R,Lmax,C)
    pool_mats = jnp.asarray(np.stack(pool_list, 0), dtype=jnp.bfloat16)
    batch_ids = jnp.asarray(np.asarray(bids, dtype=np.int32))
    return roi_pad, pool_mats, batch_ids


def conv_relu(x, w, stride):
    y = lax.conv_general_dilated(x, w, (stride, stride), 'SAME',
                                 dimension_numbers=('NCHW', 'OIHW', 'NCHW'))
    return jnp.maximum(y, 0.0)


def backbone_stand_in(img, bw):
    x1 = conv_relu(img, bw[0], 2)    # (N,   64, H/2, W/2)  ~ stage0
    x2 = conv_relu(x1, bw[1], 2)     # (N,  128, H/4, W/4)  ~ stage1
    x3 = conv_relu(x2, bw[2], 2)     # (N,  256, H/8, W/8)  ~ stage2
    x4 = conv_relu(x3, bw[3], 1)     # (N,  512, H/8, W/8)  ~ stage3 (stride->1)
    x5 = conv_relu(x4, bw[4], 1)     # (N, 2048, H/8, W/8)  ~ stage4 (stride->1)
    return x5, x1, x2, x3, x4


# ----------------------------- Labeler forward -------------------------------

def process_level(feat_nchw, bg_mask, bboxes_np, batchID_np, ind_valid,
                  GS, cls_w_t, OH, OW, num_classes):
    """Dispatch all device work for one feature level. No host syncs here."""
    N, C, fH, fW = feat_nchw.shape
    G2 = GS * GS
    feat_nhwc = jnp.transpose(feat_nchw, (0, 2, 3, 1))          # (N, fH, fW, C)

    mask_nhw = interpolate_nearest_nhw(bg_mask, fH, fW)
    bg_protos, cell_sums = grid_cell_pool(feat_nhwc, mask_nhw, GS)

    # per-image BAP gate + valid-cell mean weights (hoisted out of the kernel)
    valid = (cell_sums > 0).astype(jnp.float32)                 # (N, G2)
    count = jnp.sum(valid, axis=1)
    use_bap = ((ind_valid.astype(jnp.float32) > 0)
               & (count > 0)).astype(jnp.float32)
    wmask = (valid * use_bap[:, None]
             / jnp.maximum(count, 1.0)[:, None]).reshape(N, 1, G2)

    # L2-normalized bg prototypes for the cosine similarity (lane-dense, bf16)
    nrm = jnp.sqrt(jnp.sum(bg_protos * bg_protos, axis=2, keepdims=True))
    bgp_n = (bg_protos / jnp.maximum(nrm, 1e-12)).astype(jnp.bfloat16)

    feat_lc = feat_nhwc.reshape(N, fH * fW, C)
    roi_pad, pool_mats, batch_ids = _build_roi_inputs(
        feat_lc, fH, fW, bboxes_np, batchID_np, N, OH, OW)

    wcls = jnp.pad(cls_w_t,
                   ((0, 0), (0, NC_PAD - cls_w_t.shape[1]))).astype(jnp.bfloat16)
    fg_logits = fused_bap_cls(batch_ids, roi_pad, pool_mats, bgp_n, wmask, wcls)
    fg_logits = fg_logits[:, :num_classes]                      # (R*OP, nc)

    # bg-row classifier: tiny (Ncells, C) @ (C, nc) -> plain XLA matmul (f32)
    bg_logits = jnp.dot(bg_protos.reshape(N * G2, C), cls_w_t)
    return fg_logits, bg_logits, cell_sums


def finalize_level(fg_logits, bg_logits, cell_sums, num_classes):
    """Data-dependent valid-cell row selection (single host sync per level)."""
    cs = np.asarray(cell_sums).reshape(-1)
    valid_ids = np.nonzero(cs > 0)[0].astype(np.int32)
    bg_sel = jnp.take(bg_logits, jnp.asarray(valid_ids), axis=0)
    out = jnp.concatenate([fg_logits, bg_sel], axis=0)
    return out.reshape(out.shape[0], num_classes, 1, 1)


def labeler_forward(params, img, bboxes, batchID_of_box, bg_mask,
                    ind_valid_bg_mask, roi_size, grid_size, Features,
                    num_classes):
    OH, OW = roi_size
    GS = grid_size
    GS_list = [GS, 2 * GS, GS, GS, GS]                          # GS_1..GS_4, GS

    features, f1, f2, f3, f4 = backbone_stand_in(img, params['backbone'])
    feats = [f1, f2, f3, f4, features]
    cls_ws = [params['cls1_t'], params['cls2_t'], params['cls3_t'],
              params['cls4_t'], params['cls_t']]

    bboxes_np = np.asarray(bboxes)            # inputs only; no compute dep
    batchID_np = np.asarray(batchID_of_box)

    order = [(4, 4), (0, 0), (1, 1), (2, 2), (3, 3)]            # (flag, feat idx)

    # Phase 1: enqueue all device work for every requested level.
    staged = [None] * 5
    for flag_idx, feat_idx in order:
        if Features[flag_idx]:
            staged[flag_idx] = process_level(
                feats[feat_idx], bg_mask, bboxes_np, batchID_np,
                ind_valid_bg_mask, GS_list[feat_idx], cls_ws[feat_idx],
                OH, OW, num_classes)

    # Phase 2: host-side valid-cell selection, after everything is dispatched.
    outs = [None] * 5
    for flag_idx, _ in order:
        if staged[flag_idx] is not None:
            out_slot = 0 if flag_idx == 4 else flag_idx + 1
            outs[out_slot] = finalize_level(*staged[flag_idx], num_classes)
    return outs


# --------------------------------- main --------------------------------------

if __name__ == "__main__":
    key = jax.random.PRNGKey(0)
    num_classes = 6
    roi_size = (2, 2)
    grid_size = 2
    Features = [True, True, True, True, True]

    N, H, W = 2, 32, 32

    k_img, k_mask, k_bb, *k_ws = jax.random.split(key, 16)
    img = jax.random.normal(k_img, (N, 3, H, W), jnp.float32)
    bg_mask = (jax.random.uniform(k_mask, (N, 1, H, W)) > 0.5).astype(jnp.float32)
    bboxes = jnp.array([[-0.8, -0.7, 0.5, 0.6, 1.0],
                        [-0.3, -0.9, 0.9, 0.2, 2.0]], jnp.float32)
    batchID_of_box = jnp.array([0, 1], jnp.int32)
    ind_valid_bg_mask = jnp.array([1, 0], jnp.uint8)

    # Deterministic parameters.
    chans = [(3, 64), (64, 128), (128, 256), (256, 512), (512, 2048)]
    backbone_w = []
    for i, (cin, cout) in enumerate(chans):
        scale = 1.0 / np.sqrt(cin * 9)
        backbone_w.append(
            jax.random.normal(k_ws[i], (cout, cin, 3, 3), jnp.float32) * scale)

    def cls_weight(k, cin):
        # nn.init.normal_(std=0.01); stored transposed as (C, num_classes)
        return (jax.random.normal(k, (num_classes, cin), jnp.float32) * 0.01).T

    params = {
        'backbone': backbone_w,
        'cls1_t': cls_weight(k_ws[5], 64),
        'cls2_t': cls_weight(k_ws[6], 128),
        'cls3_t': cls_weight(k_ws[7], 256),
        'cls4_t': cls_weight(k_ws[8], 512),
        'cls_t':  cls_weight(k_ws[9], 2048),
    }

    outs = labeler_forward(params, img, bboxes, batchID_of_box, bg_mask,
                           ind_valid_bg_mask, roi_size, grid_size, Features,
                           num_classes)

    for o in outs:
        if o is not None:
            jax.block_until_ready(o)
            assert o.ndim == 4 and o.shape[1] == num_classes
            assert bool(jnp.all(jnp.isfinite(o)))

    print("KERNEL_OK")
</pallas_src>

<mosaic_0001>
module attributes {stable_mosaic.version = 11 : i64} {
  func.func @_cell_sum_kernel(%arg0: i32, %arg1: i32, %arg2: memref<8x4x512xf32, #tpu.memory_space<vmem>>, %arg3: memref<8x512xf32, #tpu.memory_space<vmem>>) attributes {dimension_semantics = [#tpu.dimension_semantics<parallel>, #tpu.dimension_semantics<parallel>], iteration_bounds = array<i64: 1, 4>, scalar_prefetch = 0 : i64, scratch_operands = 0 : i64, tpu.core_type = #tpu.core_type<tc>, window_params = [{transform_indices = @transform_0, window_bounds = array<i64: 8, 4, 512>}, {transform_indices = @transform_1, window_bounds = array<i64: 8, 512>}]} {
    %c0 = arith.constant 0 : index
    %c0_0 = arith.constant 0 : index
    %c0_1 = arith.constant 0 : index
    %0 = vector.load %arg2[%c0, %c0_0, %c0_1] : memref<8x4x512xf32, #tpu.memory_space<vmem>>, vector<8x4x512xf32>
    %cst = arith.constant dense<0.000000e+00> : vector<8x512xf32>
    %1 = vector.multi_reduction <add>, %0, %cst [1] : vector<8x4x512xf32> to vector<8x512xf32>
    %c0_2 = arith.constant 0 : index
    %c0_3 = arith.constant 0 : index
    %2 = vector.load %arg3[%c0_2, %c0_3] : memref<8x512xf32, #tpu.memory_space<vmem>>, vector<8x512xf32>
    tpu.vector_store %arg3[%c0_2, %c0_3], %1 {strides = array<i32>} : memref<8x512xf32, #tpu.memory_space<vmem>>, vector<8x512xf32>,
    return
  }
  func.func @transform_0(%arg0: i32, %arg1: i32) -> (i32, i32, i32) {
    %c0_i32 = arith.constant 0 : i32
    %c0_i32_0 = arith.constant 0 : i32
    return %arg0, %c0_i32, %arg1 : i32, i32, i32
  }
  func.func @transform_1(%arg0: i32, %arg1: i32) -> (i32, i32) {
    %c0_i32 = arith.constant 0 : i32
    return %arg0, %arg1 : i32, i32
  }
}

</mosaic_0001>

<bundles_post_ra>
// kernel: tpu_custom_call.1
= control target key start
LH: loop header
LB: loop body
LE: loop exit
PB: predicated region body
PF: predicated region fallthrough
CT: control target
= control target key end

     0   :  { %6 = vsyncpa [#allocation3], 0  ;;  %s1187_s0 = inlined_call_operand.hbm [shape: f32[8,4,2048], index: 0, kind: input, shape index: {}]   ;;  %s1188_s1 = inlined_call_operand.hbm [shape: f32[8,2048], index: 1, kind: output, shape index: {}]  }
   0x1   :  { %8 = vsyncpa [#allocation3 + $0x1], 0 }
   0x2   :  { %9 = vsyncpa [#allocation4], 0 }
   0x3   :  { %11 = vsyncpa [#allocation4 + $0x1], 0  ;;  %s849_s6 = smov 0   ;;  %s851_s7 = smov 0  }
   0x4   :  { %s853_s8 = smov 0   ;;  %s855_s9 = smov 0  }
   0x5   :  { %s857_s10 = smov 0   ;;  %s859_s11 = smov 0  }
   0x6 LB: > { %s622_s12 = sadd.s32 4294967295, %s832_s11   ;;  %s623_s13 = sadd.s32 4294967294, %s832_s11   ;;  %s832_s11 = sphi %s859_s11, %s17_s11   ;;  %s828_s10 = sphi %s857_s10, %s1201_s10   ;;  %s824_s9 = sphi %s855_s9, %s1200_s9   ;;  %s820_s8 = sphi %s853_s8, %s1199_s8   ;;  %s816_s7 = sphi %s851_s7, %s1198_s7   ;;  %s812_s6 = sphi %s849_s6, %s1197_s6  }
   0x7   : > { %s26_s14 = sadd.s32 1, %s828_s10  ;;  %s38_s15 = sadd.s32 1, %s820_s8 }
   0x8   : > { %p27_p0 = scmp.ge.s32.totalorder %s26_s14, 4  ;;  %p45_p1 = scmp.ne.s32.totalorder %s820_s8, %s816_s7 }
   0x9   : > { %p46_p2 = scmp.eq.s32.totalorder %s832_s11, 0  ;;  %p51_p3 = scmp.ne.s32.totalorder %s816_s7, %s812_s6 }
   0xa   : > { %s1203_s14 = smov (%p27_p0, %s26_s14), 0  ;;  %p52_p5 = scmp.eq.s32.totalorder %s622_s12, 0 }
   0xb   : > { %p890_p4 = por %p46_p2, %p45_p1  ;;  %s34_s17 = ssub.s32 %s828_s10, %s1203_s14 }
   0xc   : > { %p77_p6 = scmp.eq.s32.totalorder %s622_s12, 3  ;;  %p36_p7 = scmp.eq.s32.totalorder %s34_s17, 0 }
   0xd   : > { %p896_p8 = por %p52_p5, %p51_p3  ;;  %p83_p10 = scmp.eq.s32.totalorder %s623_s13, 3 }
   0xe   : > { %p900_p9 = por %p77_p6, %p45_p1  ;;  %p651_p12 = scmp.lt.s32.totalorder %s832_s11, 4 }
   0xf   : > { %s905_s20 = scalar_select %p36_p7, %s820_s8, %s38_s15  }
  0x10   : > { %s1192_s19 = scalar_select %p900_p9, 1, 0 }
  0x11   : > { %p907_p11 = por %p83_p10, %p51_p3  ;;  %s103_s22 = sand.u32 1, %s820_s8  }
  0x12   : > { %s626_s23 = sshll.u32 %s103_s22, 7  ;;  %s637_s24 = sshll.u32 %s828_s10, 8 }
  0x13   : > { %s1193_s21 = scalar_select %p907_p11, 1, 0 }
  0x14   : > { %s917_s27 = scalar_lea.hbm %s1187_s0, %s637_s24  ;;  %s107_s28 = scalar_lea.vmem [#allocation2], %s626_s23 }
  0x15   : > { %s117_s29 = sshll.u32 %s107_s28, 4  ;;  %p923_p13 = pnand %p651_p12, %p890_p4  ;;  %s919_s29 = int_to_ptr.vmem [resolvable:$true] %s117_s29 }
  0x16   : > { %s927_s2 = scalar_lea.sflag [#allocation3], %s103_s22  ;;  %s720_s3 = scalar_lea.hbm %s917_s27, 2048 }
  0x17   : > { %p721_p0 = scmp.ne.s32.totalorder %s917_s27, %s720_s3  ;;  %p722_p1 = pneg %p923_p13 }
  0x18   : > { %s725_s12 = scalar_lea.hbm %s1187_s0, 8192  ;;  %p726_p4 = scmp.lt.u32.totalorder %s917_s27, %s1187_s0 }
  0x19   : > { %p723_p2 = pnand %p722_p1, %p721_p0  ;;  %p727_p5 = scmp.lt.u32.totalorder %s725_s12, %s720_s3 }
  0x1a   : > { %p729_p7 = scmp.lt.u32.totalorder %s720_s3, %s917_s27 }
  0x1b   : > { %p724_p3 = pneg %p723_p2  ;;  %p728_p6 = por %p727_p5, %p726_p4 }
  0x1d   : > { %p730_p10 = por %p729_p7, %p728_p6 }
  0x1f   : > { %p731_p12 = pnand %p730_p10, %p724_p3 }
  0x21   : > { %734 = shalt.err (!%p731_p12)
}
  0x22   : > { %s735_s16 = scalar_lea.vmem %s919_s29, 2048  ;;  %s834_s17 = smov [#allocation2]  }
  0x23   : > { %p736_p0 = scmp.ne.s32.totalorder %s919_s29, %s735_s16  ;;  %s740_s22 = sshll.u32 %s834_s17, 4  ;;  %s741_s22 = int_to_ptr.vmem [resolvable:$false] %s740_s22 }
  0x24   : > { %s742_s23 = scalar_lea.vmem %s741_s22, 4096  ;;  %p743_p9 = scmp.lt.s32.totalorder %s919_s29, %s741_s22 }
  0x25   : > { %p738_p2 = pnand %p736_p0, %p722_p1  ;;  %p744_p4 = scmp.lt.s32.totalorder %s742_s23, %s735_s16 }
  0x27   : > { %p739_p11 = pneg %p738_p2  ;;  %p745_p5 = por %p744_p4, %p743_p9 }
  0x29   : > { %p746_p6 = pnand %p745_p5, %p739_p11 }
  0x2b   : > { %749 = shalt.err (!%p746_p6)
}
  0x2c   : > { %s835_s24 = smov 1024   ;;  %s836_s25 = smov 256  }
  0x2d   : > { %s837_s26 = smov 16   ;;  %p629_p1 = scmp.ge.s32.totalorder %s832_s11, 1 }
  0x2e   : > { %646 = dma.hbm_to_vmem [thread:$0]  (!%p923_p13), %s917_s27, 2048, %s919_s29, %s927_s2, %s835_s24, %s836_s25, %s837_s26  }
  0x2f   : > { %p125_p3 = scmp.lt.s32.totalorder %s832_s11, 5 }
  0x31   : > { %p126_p7 = pnand %p629_p1, %p125_p3 }
  0x32   : > { %s958_s28 = sand.u32 (!%p126_p7), 1, %s816_s7  }
  0x33   : > { %129 = sbr.rel (%p126_p7) target bundleno = 147 (0x93), region = 24  ;;  %s630_s3 = sshll.u32 (!%p126_p7), %s958_s28, 7 }
  0x34   : > { %s132_s4 = scalar_lea.sflag (!%p126_p7), [#allocation3], %s958_s28  ;;  %s962_s5 = scalar_lea.vmem (!%p126_p7), [#allocation2], %s630_s3 }
  0x3a   : > { %803 = dma.done.wait (%p896_p8), %s132_s4, 2048  }
  0x3b   : > { %805 = vsyncadd (%p896_p8), %s132_s4, 4294965248  ;;  %vm221_vm0 = vcmask 1043456   ;;  %v969_v0 = vld [vmem:[%s962_s5] sm:$0xff]  ;;  %v972_v1 = vld [vmem:[%s962_s5 + $0x10] sm:$0xff]  ;;  %vm478_vm1 = vcmask 1041409   ;;  %vm480_vm2 = vcmask 1042434  }
  0x3c   : > { %v975_v2 = vld [vmem:[%s962_s5 + $0x20] sm:$0xff]  ;;  %v978_v3 = vld [vmem:[%s962_s5 + $0x30] sm:$0xff]  ;;  %v222_v5 = vsel %vm221_vm0, %v969_v0, 0.0  ;;  %v250_v6 = vsel %vm221_vm0, %v972_v1, 0.0  ;;  %v189_v8 = vcombine.high %v969_v0, %v969_v0  ;;  %vm482_vm3 = vcmask 1043459   ;;  %s631_s18 = sshll.u32 %s958_s28, 5 }
  0x3d   : > { %v981_v4 = vld [vmem:[%s962_s5 + $0x40] sm:$0xff]  ;;  %v278_v7 = vsel %vm221_vm0, %v975_v2, 0.0  ;;  %v992_v9 = vld [vmem:[%s962_s5 + $0x50] sm:$0xff]  ;;  %v223_v11 = vrot.slane %v222_v5, 4  ;;  %v251_v12 = vrot.slane %v250_v6, 4  ;;  %v306_v14 = vsel %vm221_vm0, %v978_v3, 0.0 }
  0x3e   : > { %v995_v10 = vld [vmem:[%s962_s5 + $0x60] sm:$0xff]  ;;  %v279_v13 = vrot.slane %v278_v7, 4  ;;  %v307_v15 = vrot.slane %v306_v14, 4  ;;  %v334_v16 = vsel %vm221_vm0, %v981_v4, 0.0  ;;  %v362_v17 = vsel %vm221_vm0, %v992_v9, 0.0  ;;  %v1006_v19 = vld [vmem:[%s962_s5 + $0x70] sm:$0xff] }
  0x3f   : > { %v390_v18 = vsel %vm221_vm0, %v995_v10, 0.0  ;;  %v224_v20 = vadd.f32 %v223_v11, %v222_v5  ;;  %v252_v21 = vadd.f32 %v251_v12, %v250_v6  ;;  %v335_v23 = vrot.slane %v334_v16, 4  ;;  %s1041_s27 = scalar_lea.vmem [#allocation5], %s631_s18  ;;  %s638_s30 = sshll.u32 %s824_s9, 9 }
  0x40   : > { %v280_v22 = vadd.f32 %v279_v13, %v278_v7  ;;  %v308_v24 = vadd.f32 %v307_v15, %v306_v14  ;;  %v363_v25 = vrot.slane %v362_v17, 4  ;;  %v391_v26 = vrot.slane %v390_v18, 4  ;;  %s538_s29 = sshll.u32 %s1041_s27, 4  ;;  %s1139_s13 = scalar_lea.hbm %s1188_s1, %s638_s30  ;;  %s1134_s29 = int_to_ptr.vmem [resolvable:$true] %s538_s29 }
  0x41   : > { %v418_v27 = vsel %vm221_vm0, %v1006_v19, 0.0  ;;  %v225_v28 = vrot.slane %v224_v20, 2  ;;  %v253_v29 = vrot.slane %v252_v21, 2  ;;  %v336_v31 = vadd.f32 %v335_v23, %v334_v16  ;;  %s522_s15 = scalar_lea.sflag [#allocation4], %s958_s28  ;;  %s750_s16 = scalar_lea.vmem %s1134_s29, 512 }
  0x42   : > { %v281_v30 = vrot.slane %v280_v22, 2  ;;  %vm484_vm4 = vcmask 1044484   ;;  %v309_v32 = vrot.slane %v308_v24, 2  ;;  %v364_v33 = vadd.f32 %v363_v25, %v362_v17  ;;  %p751_p8 = scmp.ne.s32.totalorder %s1134_s29, %s750_s16  ;;  %p1195_p9 = scmp.ne.s32.totalorder %s1192_s19, 0 }
  0x43   : > { %v392_v34 = vadd.f32 %v391_v26, %v390_v18  ;;  %v419_v35 = vrot.slane %v418_v27, 4  ;;  %vm486_vm5 = vcmask 1045509   ;;  %v226_v36 = vadd.f32 %v225_v28, %v224_v20  ;;  %s838_s9 = smov [#allocation5]  }
  0x44   : > { %v254_v37 = vadd.f32 %v253_v29, %v252_v21  ;;  %v282_v38 = vadd.f32 %v281_v30, %v280_v22  ;;  %v337_v39 = vrot.slane %v336_v31, 2  ;;  %vm488_vm6 = vcmask 1046534   ;;  %p752_p11 = pnand %p751_p8, %p1195_p9  ;;  %s754_s17 = sshll.u32 %s838_s9, 4  ;;  %s755_s17 = int_to_ptr.vmem [resolvable:$false] %s754_s17 }
  0x45   : > { %v310_v40 = vadd.f32 %v309_v32, %v308_v24  ;;  %v365_v41 = vrot.slane %v364_v33, 2  ;;  %v393_v42 = vrot.slane %v392_v34, 2  ;;  %v420_v43 = vadd.f32 %v419_v35, %v418_v27  ;;  %s756_s22 = scalar_lea.vmem %s755_s17, 1024  ;;  %p757_p10 = scmp.lt.s32.totalorder %s1134_s29, %s755_s17 }
  0x46   : > { %vm490_vm7 = vcmask 1047559   ;;  %v227_v44 = vrot.slane %v226_v36, 1  ;;  %v255_v45 = vrot.slane %v254_v37, 1  ;;  %v283_v46 = vrot.slane %v282_v38, 1  ;;  %p753_p13 = pneg %p752_p11  ;;  %p758_p12 = scmp.lt.s32.totalorder %s756_s22, %s750_s16 }
  0x47   : > { %v338_v47 = vadd.f32 %v337_v39, %v336_v31  ;;  %v311_v48 = vrot.slane %v310_v40, 1  ;;  %v366_v49 = vadd.f32 %v365_v41, %v364_v33  ;;  %v394_v50 = vadd.f32 %v393_v42, %v392_v34 }
  0x48   : > { %v421_v51 = vrot.slane %v420_v43, 2  ;;  %v228_v52 = vadd.f32 %v227_v44, %v226_v36  ;;  %v256_v53 = vadd.f32 %v255_v45, %v254_v37  ;;  %v284_v54 = vadd.f32 %v283_v46, %v282_v38  ;;  %p759_p0 = por %p758_p12, %p757_p10 }
  0x49   : > { %v339_v55 = vrot.slane %v338_v47, 1  ;;  %v312_v56 = vadd.f32 %v311_v48, %v310_v40  ;;  %v367_v57 = vrot.slane %v366_v49, 1  ;;  %v395_v58 = vrot.slane %v394_v50, 1 }
  0x4a   : > { %v422_v59 = vadd.f32 %v421_v51, %v420_v43  ;;  %v479_v61 = vsel %vm478_vm1, %v256_v53, %v228_v52  ;;  %v191_v62 = vcombine.high %v972_v1, %v972_v1  ;;  %v193_v63 = vcombine.high %v975_v2, %v975_v2  ;;  %p760_p2 = pnand %p759_p0, %p753_p13 }
  0x4b   : > { %v340_v60 = vadd.f32 %v339_v55, %v338_v47  ;;  %v368_v5 = vadd.f32 %v367_v57, %v366_v49  ;;  %v396_v6 = vadd.f32 %v395_v58, %v394_v50  ;;  %v481_v11 = vsel %vm480_vm2, %v284_v54, %v479_v61 }
  0x4c   : > { %v423_v7 = vrot.slane %v422_v59, 1  ;;  %v483_v12 = vsel %vm482_vm3, %v312_v56, %v481_v11  ;;  %v195_v13 = vcombine.high %v978_v3, %v978_v3  ;;  %v197_v14 = vcombine.high %v981_v4, %v981_v4 }
  0x4d   : > { %v199_v1 = vcombine.high %v992_v9, %v992_v9  ;;  %v485_v2 = vsel %vm484_vm4, %v340_v60, %v483_v12  ;;  %v201_v16 = vcombine.high %v995_v10, %v995_v10  ;;  %v203_v17 = vcombine.high %v1006_v19, %v1006_v19 }
  0x4e   : > { %v424_v15 = vadd.f32 %v423_v7, %v422_v59  ;;  %v487_v18 = vsel %vm486_vm5, %v368_v5, %v485_v2  ;;  %v229_v3 = vsel %vm221_vm0, %v189_v8, 0.0  ;;  %v257_v4 = vsel %vm221_vm0, %v191_v62, 0.0  ;;  %v1047_v5 = vld [vmem:[%s962_s5 + $0x8] sm:$0xff] }
  0x4f   : > { %v285_v9 = vsel %vm221_vm0, %v193_v63, 0.0  ;;  %v489_v20 = vsel %vm488_vm6, %v396_v6, %v487_v18  ;;  %v230_v21 = vrot.slane %v229_v3, 4  ;;  %v258_v22 = vrot.slane %v257_v4, 4  ;;  %v1050_v6 = vld [vmem:[%s962_s5 + $0x18] sm:$0xff] }
  0x50   : > { %v286_v23 = vrot.slane %v285_v9, 4  ;;  %v491_v10 = vsel %vm490_vm7, %v424_v15, %v489_v20  ;;  %v313_v19 = vsel %vm221_vm0, %v195_v13, 0.0  ;;  %v341_v24 = vsel %vm221_vm0, %v197_v14, 0.0 }
  0x51   : > { %v369_v25 = vsel %vm221_vm0, %v199_v1, 0.0  ;;  %517 = vst [vmem:[%s1041_s27] sm:$0xff] %v491_v10  ;;  %v231_v0 = vadd.f32 %v230_v21, %v229_v3  ;;  %v259_v8 = vadd.f32 %v258_v22, %v257_v4  ;;  %v314_v27 = vrot.slane %v313_v19, 4  ;;  %v1065_v22 = vld [vmem:[%s962_s5 + $0x38] sm:$0xff] }
  0x52   : > { %v287_v26 = vadd.f32 %v286_v23, %v285_v9  ;;  %v342_v28 = vrot.slane %v341_v24, 4  ;;  %v370_v29 = vrot.slane %v369_v25, 4  ;;  %v397_v30 = vsel %vm221_vm0, %v201_v16, 0.0  ;;  %v1058_v16 = vld [vmem:[%s962_s5 + $0x28] sm:$0xff] }
  0x53   : > { %v425_v31 = vsel %vm221_vm0, %v203_v17, 0.0  ;;  %v232_v32 = vrot.slane %v231_v0, 2  ;;  %v260_v33 = vrot.slane %v259_v8, 2  ;;  %v315_v35 = vadd.f32 %v314_v27, %v313_v19  ;;  %v1069_v19 = vld [vmem:[%s962_s5 + $0x48] sm:$0xff] }
  0x54   : > { %v288_v34 = vrot.slane %v287_v26, 2  ;;  %v343_v36 = vadd.f32 %v342_v28, %v341_v24  ;;  %v371_v37 = vadd.f32 %v370_v29, %v369_v25  ;;  %v398_v38 = vrot.slane %v397_v30, 4 }
  0x55   : > { %v426_v39 = vrot.slane %v425_v31, 4  ;;  %v233_v40 = vadd.f32 %v232_v32, %v231_v0  ;;  %v261_v41 = vadd.f32 %v260_v33, %v259_v8  ;;  %v316_v43 = vrot.slane %v315_v35, 2 }
  0x56   : > { %v289_v42 = vadd.f32 %v288_v34, %v287_v26  ;;  %v344_v44 = vrot.slane %v343_v36, 2  ;;  %v372_v45 = vrot.slane %v371_v37, 2  ;;  %v399_v46 = vadd.f32 %v398_v38, %v397_v30  ;;  %v1078_v30 = vld [vmem:[%s962_s5 + $0x58] sm:$0xff]  ;;  %v1085_v38 = vld [vmem:[%s962_s5 + $0x68] sm:$0xff] }
  0x57   : > { %v427_v47 = vadd.f32 %v426_v39, %v425_v31  ;;  %v234_v48 = vrot.slane %v233_v40, 1  ;;  %v262_v49 = vrot.slane %v261_v41, 1  ;;  %v317_v51 = vadd.f32 %v316_v43, %v315_v35  ;;  %v1088_v39 = vld [vmem:[%s962_s5 + $0x78] sm:$0xff] }
  0x58   : > { %v290_v50 = vrot.slane %v289_v42, 1  ;;  %v345_v52 = vadd.f32 %v344_v44, %v343_v36  ;;  %v373_v53 = vadd.f32 %v372_v45, %v371_v37  ;;  %v400_v54 = vrot.slane %v399_v46, 2 }
  0x59   : > { %v428_v55 = vrot.slane %v427_v47, 2  ;;  %v235_v56 = vadd.f32 %v234_v48, %v233_v40  ;;  %v263_v57 = vadd.f32 %v262_v49, %v261_v41  ;;  %v318_v59 = vrot.slane %v317_v51, 1 }
  0x5a   : > { %v291_v58 = vadd.f32 %v290_v50, %v289_v42  ;;  %v346_v60 = vrot.slane %v345_v52, 1  ;;  %v374_v61 = vrot.slane %v373_v53, 1  ;;  %v401_v62 = vadd.f32 %v400_v54, %v399_v46 }
  0x5b   : > { %v429_v63 = vadd.f32 %v428_v55, %v427_v47  ;;  %v319_v7 = vadd.f32 %v318_v59, %v317_v51  ;;  %v492_v11 = vsel %vm478_vm1, %v263_v57, %v235_v56  ;;  %v236_v12 = vsel %vm221_vm0, %v1047_v5, 0.0 }
  0x5c   : > { %v264_v13 = vsel %vm221_vm0, %v1050_v6, 0.0  ;;  %v347_v14 = vadd.f32 %v346_v60, %v345_v52  ;;  %v375_v1 = vadd.f32 %v374_v61, %v373_v53  ;;  %v402_v15 = vrot.slane %v401_v62, 1 }
  0x5d   : > { %v430_v2 = vrot.slane %v429_v63, 1  ;;  %v493_v17 = vsel %vm480_vm2, %v291_v58, %v492_v11  ;;  %v237_v18 = vrot.slane %v236_v12, 4  ;;  %v265_v3 = vrot.slane %v264_v13, 4 }
  0x5e   : > { %v292_v4 = vsel %vm221_vm0, %v1058_v16, 0.0  ;;  %v403_v9 = vadd.f32 %v402_v15, %v401_v62  ;;  %v494_v21 = vsel %vm482_vm3, %v319_v7, %v493_v17  ;;  %v320_v0 = vsel %vm221_vm0, %v1065_v22, 0.0 }
  0x5f   : > { %v431_v20 = vadd.f32 %v430_v2, %v429_v63  ;;  %v293_v23 = vrot.slane %v292_v4, 4  ;;  %v495_v10 = vsel %vm484_vm4, %v347_v14, %v494_v21  ;;  %v238_v24 = vadd.f32 %v237_v18, %v236_v12 }
  0x60   : > { %v266_v25 = vadd.f32 %v265_v3, %v264_v13  ;;  %v496_v8 = vsel %vm486_vm5, %v375_v1, %v495_v10  ;;  %v321_v27 = vrot.slane %v320_v0, 4  ;;  %v348_v28 = vsel %vm221_vm0, %v1069_v19, 0.0 }
  0x61   : > { %v294_v26 = vadd.f32 %v293_v23, %v292_v4  ;;  %v497_v29 = vsel %vm488_vm6, %v403_v9, %v496_v8  ;;  %v239_v31 = vrot.slane %v238_v24, 2  ;;  %v349_v33 = vrot.slane %v348_v28, 4 }
  0x62   : > { %v267_v32 = vrot.slane %v266_v25, 2  ;;  %v498_v34 = vsel %vm490_vm7, %v431_v20, %v497_v29  ;;  %v322_v36 = vadd.f32 %v321_v27, %v320_v0  ;;  %v376_v37 = vsel %vm221_vm0, %v1078_v30, 0.0 }
  0x63   : > { %v295_v35 = vrot.slane %v294_v26, 2  ;;  %518 = vst [vmem:[%s1041_s27 + $0x8] sm:$0xff] %v498_v34  ;;  %v240_v40 = vadd.f32 %v239_v31, %v238_v24  ;;  %v350_v42 = vadd.f32 %v349_v33, %v348_v28  ;;  %v377_v43 = vrot.slane %v376_v37, 4 }
  0x64   : > { %v268_v41 = vadd.f32 %v267_v32, %v266_v25  ;;  %v323_v45 = vrot.slane %v322_v36, 2  ;;  %v404_v46 = vsel %vm221_vm0, %v1085_v38, 0.0  ;;  %v432_v47 = vsel %vm221_vm0, %v1088_v39, 0.0 }
  0x65   : > { %v296_v44 = vadd.f32 %v295_v35, %v294_v26  ;;  %v241_v48 = vrot.slane %v240_v40, 1  ;;  %v351_v50 = vrot.slane %v350_v42, 2  ;;  %v378_v51 = vadd.f32 %v377_v43, %v376_v37 }
  0x66   : > { %v269_v49 = vrot.slane %v268_v41, 1  ;;  %v324_v53 = vadd.f32 %v323_v45, %v322_v36  ;;  %v405_v54 = vrot.slane %v404_v46, 4  ;;  %v433_v55 = vrot.slane %v432_v47, 4 }
  0x67   : > { %v297_v52 = vrot.slane %v296_v44, 1  ;;  %v242_v56 = vadd.f32 %v241_v48, %v240_v40  ;;  %v352_v58 = vadd.f32 %v351_v50, %v350_v42  ;;  %v379_v59 = vrot.slane %v378_v51, 2 }
  0x68   : > { %v270_v57 = vadd.f32 %v269_v49, %v268_v41  ;;  %v325_v61 = vrot.slane %v324_v53, 1  ;;  %v406_v62 = vadd.f32 %v405_v54, %v404_v46  ;;  %v434_v63 = vadd.f32 %v433_v55, %v432_v47 }
  0x69   : > { %v298_v60 = vadd.f32 %v297_v52, %v296_v44  ;;  %v353_v7 = vrot.slane %v352_v58, 1  ;;  %v380_v11 = vadd.f32 %v379_v59, %v378_v51  ;;  %v190_v13 = vcombine.high %v1047_v5, %v1047_v5 }
  0x6a   : > { %v499_v12 = vsel %vm478_vm1, %v270_v57, %v242_v56  ;;  %v326_v14 = vadd.f32 %v325_v61, %v324_v53  ;;  %v407_v1 = vrot.slane %v406_v62, 2  ;;  %v435_v15 = vrot.slane %v434_v63, 2 }
  0x6b   : > { %v500_v2 = vsel %vm480_vm2, %v298_v60, %v499_v12  ;;  %v354_v17 = vadd.f32 %v353_v7, %v352_v58  ;;  %v381_v18 = vrot.slane %v380_v11, 1  ;;  %v192_v3 = vcombine.high %v1050_v6, %v1050_v6 }
  0x6c   : > { %v194_v4 = vcombine.high %v1058_v16, %v1058_v16  ;;  %v408_v9 = vadd.f32 %v407_v1, %v406_v62  ;;  %v436_v20 = vadd.f32 %v435_v15, %v434_v63  ;;  %v501_v21 = vsel %vm482_vm3, %v326_v14, %v500_v2 }
  0x6d   : > { %v196_v5 = vcombine.high %v1065_v22, %v1065_v22  ;;  %v382_v23 = vadd.f32 %v381_v18, %v380_v11  ;;  %v502_v10 = vsel %vm484_vm4, %v354_v17, %v501_v21  ;;  %v198_v24 = vcombine.high %v1069_v19, %v1069_v19 }
  0x6e   : > { %v200_v25 = vcombine.high %v1078_v30, %v1078_v30  ;;  %v409_v6 = vrot.slane %v408_v9, 1  ;;  %v437_v0 = vrot.slane %v436_v20, 1  ;;  %v202_v16 = vcombine.high %v1085_v38, %v1085_v38 }
  0x6f   : > { %v204_v8 = vcombine.high %v1088_v39, %v1088_v39  ;;  %v503_v26 = vsel %vm486_vm5, %v382_v23, %v502_v10  ;;  %v243_v22 = vsel %vm221_vm0, %v190_v13, 0.0  ;;  %v271_v27 = vsel %vm221_vm0, %v192_v3, 0.0 }
  0x70   : > { %v299_v28 = vsel %vm221_vm0, %v194_v4, 0.0  ;;  %v410_v19 = vadd.f32 %v409_v6, %v408_v9  ;;  %v438_v29 = vadd.f32 %v437_v0, %v436_v20  ;;  %v244_v30 = vrot.slane %v243_v22, 4 }
  0x71   : > { %v272_v31 = vrot.slane %v271_v27, 4  ;;  %v300_v32 = vrot.slane %v299_v28, 4  ;;  %v327_v33 = vsel %vm221_vm0, %v196_v5, 0.0  ;;  %v355_v34 = vsel %vm221_vm0, %v198_v24, 0.0 }
  0x72   : > { %v383_v35 = vsel %vm221_vm0, %v200_v25, 0.0  ;;  %v504_v36 = vsel %vm488_vm6, %v410_v19, %v503_v26  ;;  %v245_v37 = vadd.f32 %v244_v30, %v243_v22  ;;  %v328_v39 = vrot.slane %v327_v33, 4 }
  0x73   : > { %v273_v38 = vadd.f32 %v272_v31, %v271_v27  ;;  %v505_v40 = vsel %vm490_vm7, %v438_v29, %v504_v36  ;;  %v301_v41 = vadd.f32 %v300_v32, %v299_v28  ;;  %v356_v42 = vrot.slane %v355_v34, 4 }
  0x74   : > { %v384_v43 = vrot.slane %v383_v35, 4  ;;  %519 = vst [vmem:[%s1041_s27 + $0x10] sm:$0xff] %v505_v40  ;;  %v246_v44 = vrot.slane %v245_v37, 2  ;;  %v329_v46 = vadd.f32 %v328_v39, %v327_v33  ;;  %v411_v47 = vsel %vm221_vm0, %v202_v16, 0.0 }
  0x75   : > { %v274_v45 = vrot.slane %v273_v38, 2  ;;  %v302_v48 = vrot.slane %v301_v41, 2  ;;  %v357_v49 = vadd.f32 %v356_v42, %v355_v34  ;;  %v412_v51 = vrot.slane %v411_v47, 4 }
  0x76   : > { %v385_v50 = vadd.f32 %v384_v43, %v383_v35  ;;  %v247_v52 = vadd.f32 %v246_v44, %v245_v37  ;;  %v330_v54 = vrot.slane %v329_v46, 2  ;;  %v439_v55 = vsel %vm221_vm0, %v204_v8, 0.0 }
  0x77   : > { %v275_v53 = vadd.f32 %v274_v45, %v273_v38  ;;  %v303_v56 = vadd.f32 %v302_v48, %v301_v41  ;;  %v358_v57 = vrot.slane %v357_v49, 2  ;;  %v413_v59 = vadd.f32 %v412_v51, %v411_v47 }
  0x78   : > { %v386_v58 = vrot.slane %v385_v50, 2  ;;  %v248_v60 = vrot.slane %v247_v52, 1  ;;  %v331_v62 = vadd.f32 %v330_v54, %v329_v46  ;;  %v440_v63 = vrot.slane %v439_v55, 4 }
  0x79   : > { %v276_v61 = vrot.slane %v275_v53, 1  ;;  %v304_v7 = vrot.slane %v303_v56, 1  ;;  %v359_v11 = vadd.f32 %v358_v57, %v357_v49  ;;  %v414_v13 = vrot.slane %v413_v59, 2 }
  0x7a   : > { %v387_v12 = vadd.f32 %v386_v58, %v385_v50  ;;  %v249_v14 = vadd.f32 %v248_v60, %v247_v52  ;;  %v332_v15 = vrot.slane %v331_v62, 1  ;;  %v441_v2 = vadd.f32 %v440_v63, %v439_v55 }
  0x7b   : > { %v277_v1 = vadd.f32 %v276_v61, %v275_v53  ;;  %v305_v17 = vadd.f32 %v304_v7, %v303_v56  ;;  %v360_v18 = vrot.slane %v359_v11, 1  ;;  %v415_v4 = vadd.f32 %v414_v13, %v413_v59 }
  0x7c   : > { %v388_v3 = vrot.slane %v387_v12, 1  ;;  %v333_v9 = vadd.f32 %v332_v15, %v331_v62  ;;  %v442_v20 = vrot.slane %v441_v2, 2 }
  0x7d   : > { %v506_v21 = vsel %vm478_vm1, %v277_v1, %v249_v14  ;;  %v361_v5 = vadd.f32 %v360_v18, %v359_v11  ;;  %v416_v10 = vrot.slane %v415_v4, 1 }
  0x7e   : > { %v389_v23 = vadd.f32 %v388_v3, %v387_v12  ;;  %v507_v24 = vsel %vm480_vm2, %v305_v17, %v506_v21  ;;  %v443_v25 = vadd.f32 %v442_v20, %v441_v2 }
  0x7f   : > { %v508_v6 = vsel %vm482_vm3, %v333_v9, %v507_v24  ;;  %v417_v0 = vadd.f32 %v416_v10, %v415_v4 }
  0x80   : > { %v509_v16 = vsel %vm484_vm4, %v361_v5, %v508_v6  ;;  %v444_v8 = vrot.slane %v443_v25, 1 }
  0x81   : > { %v510_v26 = vsel %vm486_vm5, %v389_v23, %v509_v16 }
  0x82   : > { %v511_v22 = vsel %vm488_vm6, %v417_v0, %v510_v26  ;;  %v445_v27 = vadd.f32 %v444_v8, %v443_v25 }
  0x84   : > { %v512_v28 = vsel %vm490_vm7, %v445_v27, %v511_v22 }
  0x85   : > { %520 = vst [vmem:[%s1041_s27 + $0x18] sm:$0xff] %v512_v28 }
  0x86   : > { %763 = shalt.err (!%p760_p2)
}
  0x87   : > { %s764_s23 = scalar_lea.hbm %s1139_s13, 512  ;;  %s768_s26 = scalar_lea.hbm %s1188_s1, 2048 }
  0x88   : > { %p765_p4 = scmp.ne.s32.totalorder %s1139_s13, %s764_s23  ;;  %p769_p1 = scmp.lt.u32.totalorder %s1139_s13, %s1188_s1 }
  0x89   : > { %p770_p3 = scmp.lt.u32.totalorder %s768_s26, %s764_s23  ;;  %p772_p8 = scmp.lt.u32.totalorder %s764_s23, %s1139_s13 }
  0x8a   : > { %p766_p5 = pnand %p765_p4, %p1195_p9 }
  0x8b   : > { %p771_p7 = por %p770_p3, %p769_p1 }
  0x8c   : > { %p767_p6 = pneg %p766_p5 }
  0x8d   : > { %p773_p11 = por %p772_p8, %p771_p7 }
  0x8f   : > { %p774_p13 = pnand %p773_p11, %p767_p6 }
  0x91   : > { %777 = shalt.err (!%p774_p13)
}
  0x92   : > { %641 = dma.vmem_to_hbm [thread:$0]  (%p1195_p9), %s1134_s29, 512, %s1139_s13, %s522_s15  }
  0x93 PF: > { %p652_p10 = scmp.ge.s32.totalorder %s832_s11, 2  ;;  %s550_s4 = sand.u32 1, %s812_s6  }
  0x94   : > { %p1196_p12 = scmp.ne.s32.totalorder %s1193_s21, 0  ;;  %s551_s5 = scalar_lea.sflag [#allocation4], %s550_s4 }
  0x96   : > { %p648_p0 = pnand %p652_p10, %p1196_p12 }
  0x98   : > { %807 = dma.done.wait (!%p648_p0), %s551_s5, 512  }
  0x99   : > { %809 = vsyncadd (!%p648_p0), %s551_s5, 4294966784  ;;  %s17_s11 = sadd.s32 1, %s832_s11   ;;  %s1197_s6 = smov %s816_s7 }
  0x9a   : > { %p14_p2 = scmp.ge.s32.totalorder %s17_s11, 6   ;;  %s1198_s7 = smov %s820_s8 }
  0x9b   : > { %s1199_s8 = smov %s905_s20  ;;  %s1200_s9 = smov %s828_s10 }
  0x9c   : > { %s1201_s10 = smov %s1203_s14  ;;  %16 = sbr.rel (!%p14_p2) target bundleno = 6 (0x6), region = 69 }
  0xa3   :  { %556 = vsyncpa [#allocation3], 1 }
  0xa4   :  { %558 = vsyncpa [#allocation3 + $0x1], 1 }
  0xa5   :  { %559 = vsyncpa [#allocation4], 1 }
  0xa6   :  { %561 = vsyncpa [#allocation4 + $0x1], 1 }

</bundles_post_ra>
